<compile_context>
chip_gen: v6e
topology: v6e:2x2x1
jax: 0.10.0
libtpu: 0.0.40
codegen_flags: <defaults>
</compile_context>

<pallas_src>
import math

import jax
import jax.numpy as jnp
from jax.experimental import pallas as pl
from jax.experimental.pallas import tpu as pltpu

# ---------------- model dims (small, consistent with the module) ----------------
B = 2            # batch
T = 8            # seq len
D = 32           # emb_dim
HID = 4 * D      # FFN hidden = 128 (exactly one lane width)
GELU_C = math.sqrt(2.0 / math.pi)


def ffn_kernel(x_ref, w1_ref, b1_ref, w2_ref, b2_ref, o_ref):
    # x tile arrives f32; cast to bf16 for the MXU (at production N, pass x pre-cast to
    # bf16 from the wrapper to also halve its DMA bytes).
    x = x_ref[...].astype(jnp.bfloat16)                                 # (TILE_N, D) bf16

    # Linear 1 (MXU, bf16 inputs, f32 accumulation) + f32 bias
    mid = jnp.dot(x, w1_ref[...], preferred_element_type=jnp.float32)   # (TILE_N, HID) f32
    mid = mid + b1_ref[...]                                             # (1, HID) broadcast

    # GELU, tanh approximation (matches the PyTorch GELU module exactly), kept in f32.
    g = 0.5 * mid * (1.0 + jnp.tanh(GELU_C * (mid + 0.044715 * mid * mid * mid)))

    # Halve the live intermediate and feed the MXU bf16 for the second dot.
    g = g.astype(jnp.bfloat16)                                          # (TILE_N, HID) bf16

    # Linear 2 (MXU, f32 accumulation) + f32 bias
    out = jnp.dot(g, w2_ref[...], preferred_element_type=jnp.float32)   # (TILE_N, D) f32
    o_ref[...] = (out + b2_ref[...]).astype(o_ref.dtype)


def _pick_tile_n(n, want=256):
    """Token tile: big enough to amortize per-step overhead, but always >=2 grid programs
    when n >= 16 so the 'parallel' axis can engage v7x's second TensorCore."""
    tile = min(want, n)
    if tile >= n and n >= 16:
        tile = n // 2
    tile = max(8, (tile // 8) * 8)   # sublane-aligned
    return tile


def feed_forward(x, w1, b1, w2, b2, *, tile_n=256):
    """x: (..., D) f32.  w1: (D, HID), b1: (1, HID), w2: (HID, D), b2: (1, D) (f32 params).
    Weights are stored [in, out]: y = x @ W + b (== PyTorch's x @ W.T + b)."""
    orig_shape = x.shape
    d = orig_shape[-1]
    hid = w1.shape[1]
    x2 = x.reshape(-1, d)                      # flatten batch/seq -> (N, D)
    n = x2.shape[0]
    tn = _pick_tile_n(n, tile_n)
    n_steps = pl.cdiv(n, tn)

    # bf16 weights at the pallas_call boundary: 2x MXU throughput, half the DMA bytes.
    w1b = w1.astype(jnp.bfloat16)
    w2b = w2.astype(jnp.bfloat16)

    cost = pl.CostEstimate(
        flops=4 * n * d * hid,                  # two matmuls: 2*N*D*HID each
        transcendentals=n * hid,                # tanh per hidden element
        bytes_accessed=(n * d * 4               # x in (f32)
                        + d * hid * 2 + hid * 4  # W1 (bf16) + b1 (f32)
                        + hid * d * 2 + d * 4    # W2 (bf16) + b2 (f32)
                        + n * d * 4),            # out (f32)
    )

    out = pl.pallas_call(
        ffn_kernel,
        out_shape=jax.ShapeDtypeStruct((n, d), x.dtype),
        grid=(n_steps,),
        in_specs=[
            pl.BlockSpec((tn, d), lambda i: (i, 0)),       # x tile
            pl.BlockSpec((d, hid), lambda i: (0, 0)),      # W1 (resident, bf16)
            pl.BlockSpec((1, hid), lambda i: (0, 0)),      # b1 (f32)
            pl.BlockSpec((hid, d), lambda i: (0, 0)),      # W2 (resident, bf16)
            pl.BlockSpec((1, d), lambda i: (0, 0)),        # b2 (f32)
        ],
        out_specs=pl.BlockSpec((tn, d), lambda i: (i, 0)),
        compiler_params=pltpu.CompilerParams(
            dimension_semantics=("parallel",),             # shards token tiles on v7x's 2 TCs
            vmem_limit_bytes=32 * 1024 * 1024,
        ),
        cost_estimate=cost,
    )(x2, w1b, b1, w2b, b2)
    return out.reshape(orig_shape)


def reference_ffn(x, w1, b1, w2, b2):
    """Pure-JAX f32 reference with identical math (PyTorch module semantics)."""
    mid = x @ w1 + b1[0]
    g = 0.5 * mid * (1.0 + jnp.tanh(GELU_C * (mid + 0.044715 * mid ** 3)))
    return g @ w2 + b2[0]


def init_params(key):
    k1, k2, k3, k4 = jax.random.split(key, 4)
    sd = 0.02
    w1 = sd * jax.random.normal(k1, (D, HID), jnp.float32)
    b1 = sd * jax.random.normal(k2, (1, HID), jnp.float32)
    w2 = sd * jax.random.normal(k3, (HID, D), jnp.float32)
    b2 = sd * jax.random.normal(k4, (1, D), jnp.float32)
    return w1, b1, w2, b2


if __name__ == "__main__":
    key = jax.random.PRNGKey(0)
    kx, kp = jax.random.split(key)
    x = jax.random.normal(kx, (B, T, D), jnp.float32)
    w1, b1, w2, b2 = init_params(kp)

    out = feed_forward(x, w1, b1, w2, b2)
    out = jax.block_until_ready(out)

    ref = reference_ffn(x, w1, b1, w2, b2)
    assert out.shape == (B, T, D)
    # bf16 MXU inputs (f32 accumulation) vs f32 reference -> relaxed tolerance.
    assert jnp.allclose(out, ref, atol=3e-3, rtol=3e-2), (
        f"mismatch vs reference: max abs diff {float(jnp.max(jnp.abs(out - ref)))}")
    print("KERNEL_OK")
</pallas_src>

<mosaic_0001>
module attributes {stable_mosaic.version = 11 : i64} {
  func.func @ffn_kernel(%arg0: i32, %arg1: memref<8x32xf32, #tpu.memory_space<vmem>>, %arg2: memref<32x128xbf16, #tpu.memory_space<vmem>>, %arg3: memref<1x128xf32, #tpu.memory_space<vmem>>, %arg4: memref<128x32xbf16, #tpu.memory_space<vmem>>, %arg5: memref<1x32xf32, #tpu.memory_space<vmem>>, %arg6: memref<8x32xf32, #tpu.memory_space<vmem>>) attributes {dimension_semantics = [#tpu.dimension_semantics<parallel>], iteration_bounds = array<i64: 2>, scalar_prefetch = 0 : i64, scratch_operands = 0 : i64, tpu.core_type = #tpu.core_type<tc>, window_params = [{transform_indices = @transform_0, window_bounds = array<i64: 8, 32>}, {pipeline_mode = #tpu.pipeline_mode<synchronous>, transform_indices = @transform_1, window_bounds = array<i64: 32, 128>}, {pipeline_mode = #tpu.pipeline_mode<synchronous>, transform_indices = @transform_2, window_bounds = array<i64: 1, 128>}, {pipeline_mode = #tpu.pipeline_mode<synchronous>, transform_indices = @transform_3, window_bounds = array<i64: 128, 32>}, {pipeline_mode = #tpu.pipeline_mode<synchronous>, transform_indices = @transform_4, window_bounds = array<i64: 1, 32>}, {transform_indices = @transform_5, window_bounds = array<i64: 8, 32>}]} {
    %c0 = arith.constant 0 : index
    %c0_0 = arith.constant 0 : index
    %0 = vector.load %arg1[%c0, %c0_0] : memref<8x32xf32, #tpu.memory_space<vmem>>, vector<8x32xf32>
    %1 = arith.truncf %0 : vector<8x32xf32> to vector<8x32xbf16>
    %c0_1 = arith.constant 0 : index
    %c0_2 = arith.constant 0 : index
    %2 = vector.load %arg2[%c0_1, %c0_2] : memref<32x128xbf16, #tpu.memory_space<vmem>>, vector<32x128xbf16>
    %cst = arith.constant dense<0.000000e+00> : vector<8x128xf32>
    %3 = tpu.matmul %1, %2, %cst {dimension_numbers = #tpu.dot_dimension_numbers<[1], [0], [0], [1], [0, 0, 1, 1], [], []>} : vector<8x32xbf16>, vector<32x128xbf16>, vector<8x128xf32> -> vector<8x128xf32>
    %c0_3 = arith.constant 0 : index
    %c0_4 = arith.constant 0 : index
    %4 = vector.load %arg3[%c0_3, %c0_4] : memref<1x128xf32, #tpu.memory_space<vmem>>, vector<1x128xf32>
    %5 = vector.broadcast %4 : vector<1x128xf32> to vector<8x128xf32>
    %6 = arith.addf %3, %5 : vector<8x128xf32>
    %cst_5 = arith.constant 5.000000e-01 : f32
    %7 = vector.broadcast %cst_5 : f32 to vector<8x128xf32>
    %8 = arith.mulf %7, %6 : vector<8x128xf32>
    %cst_6 = arith.constant 4.471500e-02 : f32
    %9 = vector.broadcast %cst_6 : f32 to vector<8x128xf32>
    %10 = arith.mulf %9, %6 : vector<8x128xf32>
    %11 = arith.mulf %10, %6 : vector<8x128xf32>
    %12 = arith.mulf %11, %6 : vector<8x128xf32>
    %13 = arith.addf %6, %12 : vector<8x128xf32>
    %cst_7 = arith.constant 0.797884583 : f32
    %14 = vector.broadcast %cst_7 : f32 to vector<8x128xf32>
    %15 = arith.mulf %14, %13 : vector<8x128xf32>
    %16 = math.tanh %15 : vector<8x128xf32>
    %cst_8 = arith.constant 1.000000e+00 : f32
    %17 = vector.broadcast %cst_8 : f32 to vector<8x128xf32>
    %18 = arith.addf %17, %16 : vector<8x128xf32>
    %19 = arith.mulf %8, %18 : vector<8x128xf32>
    %20 = arith.truncf %19 : vector<8x128xf32> to vector<8x128xbf16>
    %c0_9 = arith.constant 0 : index
    %c0_10 = arith.constant 0 : index
    %21 = vector.load %arg4[%c0_9, %c0_10] : memref<128x32xbf16, #tpu.memory_space<vmem>>, vector<128x32xbf16>
    %cst_11 = arith.constant dense<0.000000e+00> : vector<8x32xf32>
    %22 = tpu.matmul %20, %21, %cst_11 {dimension_numbers = #tpu.dot_dimension_numbers<[1], [0], [0], [1], [0, 0, 1, 1], [], []>} : vector<8x128xbf16>, vector<128x32xbf16>, vector<8x32xf32> -> vector<8x32xf32>
    %c0_12 = arith.constant 0 : index
    %c0_13 = arith.constant 0 : index
    %23 = vector.load %arg5[%c0_12, %c0_13] : memref<1x32xf32, #tpu.memory_space<vmem>>, vector<1x32xf32>
    %24 = vector.broadcast %23 : vector<1x32xf32> to vector<8x32xf32>
    %25 = arith.addf %22, %24 : vector<8x32xf32>
    %c0_14 = arith.constant 0 : index
    %c0_15 = arith.constant 0 : index
    %26 = vector.load %arg6[%c0_14, %c0_15] : memref<8x32xf32, #tpu.memory_space<vmem>>, vector<8x32xf32>
    tpu.vector_store %arg6[%c0_14, %c0_15], %25 {strides = array<i32>} : memref<8x32xf32, #tpu.memory_space<vmem>>, vector<8x32xf32>,
    return
  }
  func.func @transform_0(%arg0: i32) -> (i32, i32) {
    %c0_i32 = arith.constant 0 : i32
    %c0_i32_0 = arith.constant 0 : i32
    return %arg0, %c0_i32 : i32, i32
  }
  func.func @transform_1(%arg0: i32) -> (i32, i32) {
    %c0_i32 = arith.constant 0 : i32
    %c0_i32_0 = arith.constant 0 : i32
    %c0_i32_1 = arith.constant 0 : i32
    return %c0_i32, %c0_i32_0 : i32, i32
  }
  func.func @transform_2(%arg0: i32) -> (i32, i32) {
    %c0_i32 = arith.constant 0 : i32
    %c0_i32_0 = arith.constant 0 : i32
    %c0_i32_1 = arith.constant 0 : i32
    return %c0_i32, %c0_i32_0 : i32, i32
  }
  func.func @transform_3(%arg0: i32) -> (i32, i32) {
    %c0_i32 = arith.constant 0 : i32
    %c0_i32_0 = arith.constant 0 : i32
    %c0_i32_1 = arith.constant 0 : i32
    return %c0_i32, %c0_i32_0 : i32, i32
  }
  func.func @transform_4(%arg0: i32) -> (i32, i32) {
    %c0_i32 = arith.constant 0 : i32
    %c0_i32_0 = arith.constant 0 : i32
    %c0_i32_1 = arith.constant 0 : i32
    return %c0_i32, %c0_i32_0 : i32, i32
  }
  func.func @transform_5(%arg0: i32) -> (i32, i32) {
    %c0_i32 = arith.constant 0 : i32
    %c0_i32_0 = arith.constant 0 : i32
    return %arg0, %c0_i32 : i32, i32
  }
}

</mosaic_0001>

<bundles_post_ra>
// kernel: tpu_custom_call.1
= control target key start
LH: loop header
LB: loop body
LE: loop exit
PB: predicated region body
PF: predicated region fallthrough
CT: control target
= control target key end

     0   :  { %10 = vsyncpa [#allocation3], 0  ;;  %s833_s0 = inlined_call_operand.vmem [shape: f32[16,32], index: 0, kind: input, shape index: {}]   ;;  %s834_s1 = inlined_call_operand.vmem [shape: bf16[32,128], index: 1, kind: input, shape index: {}]   ;;  %s835_s2 = inlined_call_operand.vmem [shape: f32[1,128], index: 2, kind: input, shape index: {}]   ;;  %s836_s3 = inlined_call_operand.vmem [shape: bf16[128,32], index: 3, kind: input, shape index: {}]   ;;  %s837_s4 = inlined_call_operand.vmem [shape: f32[1,32], index: 4, kind: input, shape index: {}]   ;;  %s838_s5 = inlined_call_operand.hbm [shape: f32[16,32], index: 5, kind: output, shape index: {}]  }
   0x1   :  { %12 = vsyncpa [#allocation3 + $0x1], 0  ;;  %s696_s18 = smov 0   ;;  %s698_s19 = smov 0  }
   0x2   :  { %s700_s20 = smov 0   ;;  %s702_s21 = smov 0  }
   0x3 LB: > { %s717_s22 = sadd.s32 4294967295, %s661_s21   ;;  %s485_s23 = sadd.s32 4294967294, %s661_s21   ;;  %s661_s21 = sphi %s702_s21, %s844_s21   ;;  %s657_s20 = sphi %s700_s20, %s843_s20   ;;  %s653_s19 = sphi %s698_s19, %s842_s19   ;;  %s649_s18 = sphi %s696_s18, %s841_s18  }
   0x4   : > { %s721_s24 = sadd.s32 1, %s661_s21   ;;  %s135_s25 = sadd.s32 1, %s657_s20 }
   0x5   : > { %s132_s26 = ssub.s32 %s661_s21, %s721_s24  ;;  %p145_p0 = scmp.ne.s32.totalorder %s657_s20, %s653_s19 }
   0x6   : > { %p133_p1 = scmp.eq.s32.totalorder %s132_s26, 0  ;;  %p146_p2 = scmp.eq.s32.totalorder %s717_s22, 1 }
   0x7   : > { %p151_p3 = scmp.ne.s32.totalorder %s653_s19, %s649_s18  ;;  %p152_p4 = scmp.eq.s32.totalorder %s485_s23, 1 }
   0x8   : > { %s732_s27 = scalar_select %p133_p1, %s657_s20, %s135_s25  }
   0x9   : > { %p734_p5 = por %p146_p2, %p145_p0  ;;  %p738_p6 = por %p152_p4, %p151_p3 }
   0xa   : > { %p488_p7 = scmp.ge.s32.totalorder %s661_s21, 1  ;;  %p189_p8 = scmp.lt.s32.totalorder %s661_s21, 3 }
   0xc   : > { %p190_p9 = pnand %p488_p7, %p189_p8 }
   0xd   : > { %p216_p10 = scmp.lt.s32.totalorder (!%p190_p9), %s717_s22, 1  ;;  %s213_s16 = sand.u32 (!%p190_p9), 1, %s653_s19  }
   0xe   : > { %193 = sbr.rel (%p190_p9) target bundleno = 462 (0x1ce), region = 40  ;;  %s489_s17 = sshll.u32 (!%p190_p9), %s213_s16, 3 }
   0xf   : > { %s505_s26 = sshll.u32 (!%p190_p9), %s717_s22, 7  ;;  %s215_s30 = scalar_lea.vmem (!%p190_p9), [#allocation2], %s489_s17 }
  0x10   : > { %s426_s6 = sshll.u32 (!%p190_p9), %s215_s30, 4  ;;  %s665_s11 = smov (!%p190_p9), [#allocation2]   ;;  %s793_s6 = int_to_ptr.vmem [resolvable:$true] %s426_s6 }
  0x11   : > { %s605_s12 = sshll.u32 (!%p190_p9), %s665_s11, 4  ;;  %s606_s12 = int_to_ptr.vmem [resolvable:$false] %s605_s12 }
  0x12   : > { %p608_p0 = scmp.lt.s32.totalorder (!%p190_p9), %s793_s6, %s606_s12 }
  0x13   : > { %v589_v0 = vld [vmem:[%s834_s1 + $0x8] sm:$0xff]   ;;  %v663_v1 = vmov 0.0   ;;  %v590_v2 = vld [vmem:[%s834_s1] sm:$0xff]   ;;  %vm664_vm0 = vmmov 0   ;;  %s217_s9 = scalar_select %p216_p10, %s717_s22, 1  ;;  %vm246_vm1 = vcmask 261120  }
  0x14   : > { %520 = vmatprep.subr.bf16.mxu0 %v663_v1  ;;  %528 = vmatprep.subr.bf16.mxu1 %v663_v1  ;;  %v591_v5 = vld [vmem:[%s836_s3 + $0x38] sm:$0xff]   ;;  %v592_v6 = vld [vmem:[%s836_s3 + $0x30] sm:$0xff]   ;;  %v593_v7 = vld [vmem:[%s836_s3 + $0x28] sm:$0xff]   ;;  %s601_s22 = scalar_lea.vmem %s793_s6, 128 }
  0x15   : > { %521 = vmatpush3.bf16.msra.mxu0 %v589_v0  ;;  %524 = vmatprep.mubr.msk.bf16.mxu0 %vm664_vm0, %v663_v1  ;;  %s490_s10 = sshll.u32 %s217_s9, 3  ;;  %v594_v8 = vld [vmem:[%s836_s3 + $0x20] sm:$0xff]   ;;  %v595_v9 = vld [vmem:[%s836_s3 + $0x18] sm:$0xff]   ;;  %v596_v10 = vld [vmem:[%s836_s3 + $0x10] sm:$0xff]   ;;  %s791_s9 = scalar_lea.hbm %s838_s5, %s505_s26 }
  0x16   : > { %522 = vmatprep.subr.bf16.mxu0 %v663_v1  ;;  %544 = vmatprep.mubr.msk.bf16.mxu1 %vm664_vm0, %v663_v1  ;;  %s219_s13 = scalar_lea.vmem %s833_s0, %s490_s10  ;;  %v597_v11 = vld [vmem:[%s836_s3 + $0x8] sm:$0xff]   ;;  %v598_v12 = vld [vmem:[%s836_s3] sm:$0xff]   ;;  %s413_s10 = scalar_lea.sflag [#allocation3], %s213_s16 }
  0x17   : > { %v221_v3 = vld [vmem:[%s219_s13] sm:$0xff]  ;;  %529 = vmatpush3.bf16.msra.mxu1 %v591_v5  ;;  %p602_p11 = scmp.ne.s32.totalorder %s793_s6, %s601_s22  ;;  %s607_s13 = scalar_lea.vmem %s606_s12, 256 }
  0x18   : > { %v222_v4 = vpack.c.bf16 %v221_v3, %v221_v3  ;;  %530 = vmatprep.subr.bf16.mxu1 %v663_v1  ;;  %v491_v13 = vld [vmem:[%s835_s2] ss:$0 sm:$0xff]  ;;  %p609_p1 = scmp.lt.s32.totalorder %s607_s13, %s601_s22 }
  0x19   : > { %523 = vmatpush3.bf16.msra.mxu0 %v590_v2  ;;  %v495_v29 = vld [vmem:[%s837_s4] ss:$0 sm:$0xff]  ;;  %p603_p12 = pnand %p602_p11, %p734_p5 }
  0x1a   : > { %p610_p2 = por %p609_p1, %p608_p0 }
  0x1b   : > { %531 = vmatpush3.bf16.msra.mxu1 %v592_v6  ;;  %p604_p13 = pneg %p603_p12 }
  0x1c   : > { %525 = vmatmul.mubr.msk.bf16.vlgmr.msra.gmra.mxu0 %vm246_vm1, %v222_v4  ;;  %532 = vmatprep.subr.bf16.mxu1 %v663_v1 }
  0x1d   : > { %p611_p3 = pnand %p610_p2, %p604_p13 }
  0x1f   : > { %533 = vmatpush3.bf16.msra.mxu1 %v593_v7 }
  0x20   : > { %534 = vmatprep.subr.bf16.mxu1 %v663_v1 }
  0x23   : > { %535 = vmatpush3.bf16.msra.mxu1 %v594_v8 }
  0x24   : > { %536 = vmatprep.subr.bf16.mxu1 %v663_v1 }
  0x27   : > { %537 = vmatpush3.bf16.msra.mxu1 %v595_v9 }
  0x28   : > { %538 = vmatprep.subr.bf16.mxu1 %v663_v1 }
  0x2b   : > { %539 = vmatpush3.bf16.msra.mxu1 %v596_v10 }
  0x2c   : > { %540 = vmatprep.subr.bf16.mxu1 %v663_v1 }
  0x2f   : > { %541 = vmatpush3.bf16.msra.mxu1 %v597_v11 }
  0x30   : > { %542 = vmatprep.subr.bf16.mxu1 %v663_v1 }
  0x33   : > { %543 = vmatpush3.bf16.msra.mxu1 %v598_v12 }
  0xdc   : > { %v284_v14 = vpop.f32.mrf.mxu0 }
  0xdd   : > { %v285_v15 = vadd.f32 %v491_v13, %v284_v14 }
  0xde   : > { %v526_v16 = vpop.f32.mrf.mxu0 }
  0xdf   : > { %v291_v17 = vmul.f32 0.044715, %v285_v15  ;;  %v290_v25 = vmul.f32 0.5, %v285_v15 }
  0xe0   : > { %v287_v18 = vpop.f32.mrf.mxu0 }
  0xe1   : > { %v292_v19 = vmul.f32 %v291_v17, %v285_v15 }
  0xe2   : > { %v527_v20 = vpop.f32.mrf.mxu0 }
  0xe3   : > { %v293_v21 = vmul.f32 %v292_v19, %v285_v15 }
  0xe5   : > { %v294_v22 = vadd.f32 %v293_v21, %v285_v15 }
  0xe7   : > { %v295_v23 = vmul.f32 0.7978846, %v294_v22 }
  0xe9   : > { %599 = vtanh.f32 %v295_v23 }
  0xf6   : > { %v600_v24 = vpop.eup %599 }
  0xf7   : > { %v297_v26 = vadd.f32 1.0, %v600_v24 }
  0xf9   : > { %v298_v27 = vmul.f32 %v297_v26, %v290_v25 }
  0xfb   : > { %v299_v28 = vpack.c.bf16 %v298_v27, %v298_v27 }
  0xfd   : > { %545 = vmatmul.mubr.bf16.vlgmr.msra.gmra.mxu1 %v299_v28 }
 0x1bd   : > { %v405_v30 = vpop.f32.mrf.mxu1 }
 0x1be   : > { %v406_v31 = vadd.f32 %v495_v29, %v405_v30 }
 0x1bf   : > { %v546_v32 = vpop.f32.mrf.mxu1 }
 0x1c0   : > { %411 = vst.msk [vmem:[%s215_s30] sm:$0xff] %vm246_vm1, %v406_v31 }
 0x1c1   : > { %v408_v33 = vpop.f32.mrf.mxu1 }
 0x1c2   : > { %614 = shalt.err (!%p611_p3)
}
 0x1c3   : > { %s615_s14 = scalar_lea.hbm %s791_s9, 128  ;;  %s619_s17 = scalar_lea.hbm %s838_s5, 256 }
 0x1c4   : > { %p616_p4 = scmp.ne.s32.totalorder %s791_s9, %s615_s14  ;;  %p620_p9 = scmp.lt.s32.totalorder %s791_s9, %s838_s5 }
 0x1c5   : > { %p621_p10 = scmp.lt.s32.totalorder %s619_s17, %s615_s14 }
 0x1c6   : > { %p617_p7 = pnand %p616_p4, %p734_p5 }
 0x1c7   : > { %p622_p11 = por %p621_p10, %p620_p9 }
 0x1c8   : > { %p618_p8 = pneg %p617_p7 }
 0x1ca   : > { %p623_p12 = pnand %p622_p11, %p618_p8 }
 0x1cc   : > { %626 = shalt.err (!%p623_p12)
}
 0x1cd   : > { %548 = dma.vmem_to_hbm [thread:$0]  (%p734_p5), %s793_s6, 128, %s791_s9, %s413_s10   ;;  %v547_v34 = vpop.f32.mrf.mxu1 }
 0x1ce PF: > { %p554_p13 = scmp.ge.s32.totalorder %s661_s21, 2  ;;  %s438_s26 = sand.u32 1, %s649_s18  }
 0x1cf   : > { %s439_s30 = scalar_lea.sflag [#allocation3], %s438_s26 }
 0x1d0   : > { %p551_p0 = pnand %p554_p13, %p738_p6 }
 0x1d2   : > { %p552_p1 = pneg %p551_p0 }
 0x1d4   : > { %644 = dma.done.wait (%p552_p1), %s439_s30, 128  }
 0x1d5   : > { %646 = vsyncadd (%p552_p1), %s439_s30, 4294967168  ;;  %p15_p2 = scmp.ge.s32.totalorder %s721_s24, 4   ;;  %s841_s18 = smov %s653_s19 }
 0x1d6   : > { %s842_s19 = smov %s657_s20  ;;  %s843_s20 = smov %s732_s27 }
 0x1d7   : > { %s844_s21 = smov %s721_s24  ;;  %17 = sbr.rel (!%p15_p2) target bundleno = 3 (0x3), region = 75 }
 0x1dc   :  { %444 = vsyncpa [#allocation3], 1 }
 0x1dd   :  { %446 = vsyncpa [#allocation3 + $0x1], 1 }

</bundles_post_ra>
